<compile_context>
chip_gen: v6e
topology: v6e:2x2x1
jax: 0.10.0
libtpu: 0.0.40
codegen_flags: <defaults>
</compile_context>

<pallas_src>
import jax
import jax.numpy as jnp
from jax.experimental import pallas as pl
from jax.experimental.pallas import tpu as pltpu


def gcn_spa_kernel(xp_ref, g_ref, w_ref, y_ref, psum_ref, psumsq_ref):
    """One grid step = `block_n` batch elements.

    Computes  y = (g @ x) @ Ww  +  x @ W1   for every (batch, seg) position,
    plus the per-channel partial sum / sum-of-squares needed for BatchNorm,
    all in one pass so the activation makes a single HBM round trip.
    """
    Nb, W, H, Cin = xp_ref.shape
    Cout = w_ref.shape[-1]

    xp = xp_ref[...]                                     # (Nb, W, H, Cin)
    g = g_ref[...]                                       # (Nb, W, H, H)

    # graph aggregation: per-(n, seg) matmul  g_nw @ x_nw  (batched on MXU)
    xp3 = xp.reshape(Nb * W, H, Cin)
    g3 = g.reshape(Nb * W, H, H)
    t = jnp.einsum("bhk,bkc->bhc", g3, xp3,
                   preferred_element_type=jnp.float32)   # (Nb*W, H, Cin) f32

    # Two 1x1 convs (channel projections) sharing one stacked weight ref
    # (single DMA per step) and one f32 accumulator.  The [t|x] concat-along-K
    # fusion from the review is not used: lane-dim concatenation of <128-wide
    # tiles does not lower reliably on Mosaic.
    t2 = t.astype(xp.dtype).reshape(Nb * W * H, Cin)
    x2 = xp.reshape(Nb * W * H, Cin)
    y2 = (jnp.dot(t2, w_ref[0], preferred_element_type=jnp.float32)
          + jnp.dot(x2, w_ref[1], preferred_element_type=jnp.float32))

    # lane-dense store: minor dim = Cout (>=128 at module widths) -> unmasked vst
    y_ref[...] = y2.reshape(Nb, W, H, Cout)

    # per-grid-step *partial* BN statistics (no cross-step accumulator), so the
    # batch grid axis stays "parallel" / shardable across TensorCores.
    psum_ref[...] = jnp.sum(y2, axis=0, keepdims=True).reshape(1, 1, Cout)
    psumsq_ref[...] = jnp.sum(y2 * y2, axis=0, keepdims=True).reshape(1, 1, Cout)


def gcn_spa_forward(x1, g, ww, w1, gamma, beta, eps=1e-5, *,
                    mxu_dtype=jnp.bfloat16, block_n=None):
    """gcn_spa forward.  x1: (N, Cin, H, W) NCHW; g: (N, W, H, H).
    Returns (N, Cout, H, W), matching the PyTorch module (training-mode BN)."""
    N, Cin, H, W = x1.shape
    Cout = ww.shape[1]

    if block_n is None:
        # as many batch elements per grid step as a ~8 MiB activation budget
        # allows (amortizes per-step overhead; re-derive the budget for v7x's
        # 64 MiB physical VMEM when scaling block sizes).
        per_elem = 4 * W * H * (Cin + H + 2 * Cout)
        block_n = max(1, min(N, (8 << 20) // max(per_elem, 1)))
        while N % block_n:
            block_n -= 1
    assert N % block_n == 0, (N, block_n)
    steps = N // block_n

    # boundary permute (glue): NCHW -> (N, W, H, Cin); MXU operands in bf16
    # (f32 accumulation in-kernel); BN statistics & epilogue stay f32.
    xp = jnp.transpose(x1, (0, 3, 2, 1)).astype(mxu_dtype)
    gq = g.astype(mxu_dtype)
    wstack = jnp.stack([ww, w1], axis=0).astype(mxu_dtype)      # (2, Cin, Cout)

    itemsize = jnp.dtype(mxu_dtype).itemsize
    flops = 2 * N * W * H * H * Cin + 4 * N * W * H * Cin * Cout
    bytes_accessed = ((N * W * H * (Cin + H) + 2 * Cin * Cout) * itemsize
                      + N * W * H * Cout * 4 + 2 * steps * Cout * 4)

    y, psum, psumsq = pl.pallas_call(
        gcn_spa_kernel,
        out_shape=(
            jax.ShapeDtypeStruct((N, W, H, Cout), jnp.float32),
            jax.ShapeDtypeStruct((steps, 1, Cout), jnp.float32),
            jax.ShapeDtypeStruct((steps, 1, Cout), jnp.float32),
        ),
        grid=(steps,),
        in_specs=[
            pl.BlockSpec((block_n, W, H, Cin), lambda i: (i, 0, 0, 0)),
            pl.BlockSpec((block_n, W, H, H), lambda i: (i, 0, 0, 0)),
            pl.BlockSpec((2, Cin, Cout), lambda i: (0, 0, 0)),
        ],
        out_specs=(
            pl.BlockSpec((block_n, W, H, Cout), lambda i: (i, 0, 0, 0)),
            pl.BlockSpec((1, 1, Cout), lambda i: (i, 0, 0)),
            pl.BlockSpec((1, 1, Cout), lambda i: (i, 0, 0)),
        ),
        compiler_params=pltpu.CompilerParams(
            dimension_semantics=("parallel",),
            vmem_limit_bytes=32 * 1024 * 1024),
        cost_estimate=pl.CostEstimate(flops=flops, transcendentals=0,
                                      bytes_accessed=bytes_accessed),
    )(xp, gq, wstack)

    # Fold the in-kernel partial reductions into BN scale/shift (training-mode
    # batch statistics, biased variance, eps=1e-5, like a fresh nn.BatchNorm2d).
    cnt = jnp.float32(N * W * H)
    s = jnp.sum(psum, axis=(0, 1))
    ss = jnp.sum(psumsq, axis=(0, 1))
    mean = s / cnt
    var = jnp.maximum(ss / cnt - mean * mean, 0.0)
    # TODO(synk): use a two-pass / shifted variance if production activations
    # have |mean| >> std (E[x^2]-E[x]^2 can cancel catastrophically).
    scale = gamma / jnp.sqrt(var + eps)
    shift = beta - mean * scale

    # TODO(synk): BatchNorm running_mean/running_var (module state) update is
    # not modeled.  w1's optional bias (bias=True in SpatialNet) is a pre-BN
    # per-channel constant and cancels exactly in the BatchNorm forward.
    # Epilogue in plain JAX: BN affine + ReLU fused by XLA with the boundary
    # transpose back to NCHW -> one HBM read + one write, no second pallas_call.
    out = jnp.maximum(y * scale + shift, 0.0)
    return jnp.transpose(out, (0, 3, 2, 1))


def gcn_spa_reference(x1, g, ww, w1, gamma, beta, eps=1e-5):
    """Pure-JAX f32 reference mirroring the PyTorch gcn_spa forward."""
    xp = jnp.transpose(x1, (0, 3, 2, 1))                       # (N, W, H, Cin)
    t = jnp.einsum("nwhk,nwkc->nwhc", g, xp)                   # g.matmul(x)
    y = (jnp.einsum("nwhc,cd->nwhd", t, ww)
         + jnp.einsum("nwhc,cd->nwhd", xp, w1))
    y = jnp.transpose(y, (0, 3, 2, 1))                         # NCHW
    mean = jnp.mean(y, axis=(0, 2, 3), keepdims=True)
    var = jnp.mean((y - mean) ** 2, axis=(0, 2, 3), keepdims=True)
    yn = (y - mean) / jnp.sqrt(var + eps)
    yn = yn * gamma.reshape(1, -1, 1, 1) + beta.reshape(1, -1, 1, 1)
    return jnp.maximum(yn, 0.0)


if __name__ == "__main__":
    # shapes consistent with the module: x1 (batch, in_feature, joints, seg),
    # g (batch, seg, joints, joints).  out_feature=128 matches the real
    # SpatialNet channel widths (dim//2 .. dim) and keeps stores lane-dense.
    N, Cin, Cout, H, W = 2, 64, 128, 16, 8
    key = jax.random.PRNGKey(0)
    k1, k2, k3, k4 = jax.random.split(key, 4)

    x1 = jax.random.normal(k1, (N, Cin, H, W), dtype=jnp.float32)
    g = jax.nn.softmax(jax.random.normal(k2, (N, W, H, H), dtype=jnp.float32),
                       axis=-1)
    # conv weights stored as (Cin, Cout) so a 1x1 conv is `x @ w`
    # (== PyTorch weight[:, :, 0, 0].T); fresh BatchNorm2d affine params.
    ww = 0.1 * jax.random.normal(k3, (Cin, Cout), dtype=jnp.float32)
    w1 = 0.1 * jax.random.normal(k4, (Cin, Cout), dtype=jnp.float32)
    gamma = jnp.ones((Cout,), dtype=jnp.float32)
    beta = jnp.zeros((Cout,), dtype=jnp.float32)

    ref = jax.block_until_ready(gcn_spa_reference(x1, g, ww, w1, gamma, beta))

    # (1) f32 path: tight correctness check against the pure-JAX reference.
    out_f32 = jax.block_until_ready(
        gcn_spa_forward(x1, g, ww, w1, gamma, beta, mxu_dtype=jnp.float32))
    assert out_f32.shape == (N, Cout, H, W), out_f32.shape
    err32 = float(jnp.max(jnp.abs(out_f32 - ref)))
    assert jnp.allclose(out_f32, ref, rtol=1e-3, atol=1e-3), err32

    # (2) default perf path (bf16 MXU operands, f32 accumulation): sanity check.
    out_bf16 = jax.block_until_ready(
        gcn_spa_forward(x1, g, ww, w1, gamma, beta))
    assert out_bf16.shape == (N, Cout, H, W), out_bf16.shape
    errbf = float(jnp.max(jnp.abs(out_bf16 - ref)))
    assert jnp.allclose(out_bf16, ref, rtol=1e-1, atol=1e-1), errbf

    print("KERNEL_OK")
</pallas_src>

<mosaic_0001>
module attributes {stable_mosaic.version = 11 : i64} {
  func.func @gcn_spa_kernel(%arg0: i32, %arg1: memref<2x8x16x64xf32, #tpu.memory_space<vmem>>, %arg2: memref<2x8x16x16xf32, #tpu.memory_space<vmem>>, %arg3: memref<2x64x128xf32, #tpu.memory_space<vmem>>, %arg4: memref<2x8x16x128xf32, #tpu.memory_space<vmem>>, %arg5: memref<1x1x128xf32, #tpu.memory_space<vmem>>, %arg6: memref<1x1x128xf32, #tpu.memory_space<vmem>>) attributes {dimension_semantics = [#tpu.dimension_semantics<parallel>], iteration_bounds = array<i64: 1>, scalar_prefetch = 0 : i64, scratch_operands = 0 : i64, tpu.core_type = #tpu.core_type<tc>, window_params = [{transform_indices = @transform_0, window_bounds = array<i64: 2, 8, 16, 64>}, {transform_indices = @transform_1, window_bounds = array<i64: 2, 8, 16, 16>}, {pipeline_mode = #tpu.pipeline_mode<synchronous>, transform_indices = @transform_2, window_bounds = array<i64: 2, 64, 128>}, {transform_indices = @transform_3, window_bounds = array<i64: 2, 8, 16, 128>}, {transform_indices = @transform_4, window_bounds = array<i64: 1, 1, 128>}, {transform_indices = @transform_5, window_bounds = array<i64: 1, 1, 128>}]} {
    %c0 = arith.constant 0 : index
    %c0_0 = arith.constant 0 : index
    %c0_1 = arith.constant 0 : index
    %c0_2 = arith.constant 0 : index
    %0 = vector.load %arg1[%c0, %c0_0, %c0_1, %c0_2] : memref<2x8x16x64xf32, #tpu.memory_space<vmem>>, vector<2x8x16x64xf32>
    %c0_3 = arith.constant 0 : index
    %c0_4 = arith.constant 0 : index
    %c0_5 = arith.constant 0 : index
    %c0_6 = arith.constant 0 : index
    %1 = vector.load %arg2[%c0_3, %c0_4, %c0_5, %c0_6] : memref<2x8x16x16xf32, #tpu.memory_space<vmem>>, vector<2x8x16x16xf32>
    %2 = vector.shape_cast %0 : vector<2x8x16x64xf32> to vector<16x16x64xf32>
    %3 = vector.shape_cast %1 : vector<2x8x16x16xf32> to vector<16x16x16xf32>
    "tpu.trace_start"() <{level = 10 : i32, message = "bhk,bkc->bhc"}> : () -> ()
    %cst = arith.constant dense<0.000000e+00> : vector<16x16x64xf32>
    %4 = tpu.matmul %3, %2, %cst {dimension_numbers = #tpu.dot_dimension_numbers<[2], [1], [1], [2], [0, 0, 0, 1, 1, 2], [0], [0]>} : vector<16x16x16xf32>, vector<16x16x64xf32>, vector<16x16x64xf32> -> vector<16x16x64xf32>
    "tpu.trace_stop"() : () -> ()
    %5 = vector.shape_cast %4 : vector<16x16x64xf32> to vector<256x64xf32>
    %6 = vector.shape_cast %0 : vector<2x8x16x64xf32> to vector<256x64xf32>
    %c0_7 = arith.constant 0 : index
    %c0_8 = arith.constant 0 : index
    %c0_9 = arith.constant 0 : index
    %7 = vector.load %arg3[%c0_7, %c0_8, %c0_9] : memref<2x64x128xf32, #tpu.memory_space<vmem>>, vector<1x64x128xf32>
    %8 = vector.shape_cast %7 : vector<1x64x128xf32> to vector<64x128xf32>
    %cst_10 = arith.constant dense<0.000000e+00> : vector<256x128xf32>
    %9 = tpu.matmul %5, %8, %cst_10 {dimension_numbers = #tpu.dot_dimension_numbers<[1], [0], [0], [1], [0, 0, 1, 1], [], []>} : vector<256x64xf32>, vector<64x128xf32>, vector<256x128xf32> -> vector<256x128xf32>
    %c1 = arith.constant 1 : index
    %c0_11 = arith.constant 0 : index
    %c0_12 = arith.constant 0 : index
    %10 = vector.load %arg3[%c1, %c0_11, %c0_12] : memref<2x64x128xf32, #tpu.memory_space<vmem>>, vector<1x64x128xf32>
    %11 = vector.shape_cast %10 : vector<1x64x128xf32> to vector<64x128xf32>
    %cst_13 = arith.constant dense<0.000000e+00> : vector<256x128xf32>
    %12 = tpu.matmul %6, %11, %cst_13 {dimension_numbers = #tpu.dot_dimension_numbers<[1], [0], [0], [1], [0, 0, 1, 1], [], []>} : vector<256x64xf32>, vector<64x128xf32>, vector<256x128xf32> -> vector<256x128xf32>
    %13 = arith.addf %9, %12 : vector<256x128xf32>
    %14 = vector.shape_cast %13 : vector<256x128xf32> to vector<2x8x16x128xf32>
    %c0_14 = arith.constant 0 : index
    %c0_15 = arith.constant 0 : index
    %c0_16 = arith.constant 0 : index
    %c0_17 = arith.constant 0 : index
    %15 = vector.load %arg4[%c0_14, %c0_15, %c0_16, %c0_17] : memref<2x8x16x128xf32, #tpu.memory_space<vmem>>, vector<2x8x16x128xf32>
    tpu.vector_store %arg4[%c0_14, %c0_15, %c0_16, %c0_17], %14 {strides = array<i32>} : memref<2x8x16x128xf32, #tpu.memory_space<vmem>>, vector<2x8x16x128xf32>,
    %cst_18 = arith.constant dense<0.000000e+00> : vector<128xf32>
    %16 = vector.multi_reduction <add>, %13, %cst_18 [0] : vector<256x128xf32> to vector<128xf32>
    %17 = vector.shape_cast %16 : vector<128xf32> to vector<1x128xf32>
    %18 = vector.shape_cast %17 : vector<1x128xf32> to vector<1x1x128xf32>
    %c0_19 = arith.constant 0 : index
    %c0_20 = arith.constant 0 : index
    %c0_21 = arith.constant 0 : index
    %19 = vector.load %arg5[%c0_19, %c0_20, %c0_21] : memref<1x1x128xf32, #tpu.memory_space<vmem>>, vector<1x1x128xf32>
    tpu.vector_store %arg5[%c0_19, %c0_20, %c0_21], %18 {strides = array<i32>} : memref<1x1x128xf32, #tpu.memory_space<vmem>>, vector<1x1x128xf32>,
    %20 = arith.mulf %13, %13 : vector<256x128xf32>
    %cst_22 = arith.constant dense<0.000000e+00> : vector<128xf32>
    %21 = vector.multi_reduction <add>, %20, %cst_22 [0] : vector<256x128xf32> to vector<128xf32>
    %22 = vector.shape_cast %21 : vector<128xf32> to vector<1x128xf32>
    %23 = vector.shape_cast %22 : vector<1x128xf32> to vector<1x1x128xf32>
    %c0_23 = arith.constant 0 : index
    %c0_24 = arith.constant 0 : index
    %c0_25 = arith.constant 0 : index
    %24 = vector.load %arg6[%c0_23, %c0_24, %c0_25] : memref<1x1x128xf32, #tpu.memory_space<vmem>>, vector<1x1x128xf32>
    tpu.vector_store %arg6[%c0_23, %c0_24, %c0_25], %23 {strides = array<i32>} : memref<1x1x128xf32, #tpu.memory_space<vmem>>, vector<1x1x128xf32>,
    return
  }
  func.func @transform_0(%arg0: i32) -> (i32, i32, i32, i32) {
    %c0_i32 = arith.constant 0 : i32
    %c0_i32_0 = arith.constant 0 : i32
    %c0_i32_1 = arith.constant 0 : i32
    %c0_i32_2 = arith.constant 0 : i32
    return %arg0, %c0_i32, %c0_i32_0, %c0_i32_1 : i32, i32, i32, i32
  }
  func.func @transform_1(%arg0: i32) -> (i32, i32, i32, i32) {
    %c0_i32 = arith.constant 0 : i32
    %c0_i32_0 = arith.constant 0 : i32
    %c0_i32_1 = arith.constant 0 : i32
    %c0_i32_2 = arith.constant 0 : i32
    return %arg0, %c0_i32, %c0_i32_0, %c0_i32_1 : i32, i32, i32, i32
  }
  func.func @transform_2(%arg0: i32) -> (i32, i32, i32) {
    %c0_i32 = arith.constant 0 : i32
    %c0_i32_0 = arith.constant 0 : i32
    %c0_i32_1 = arith.constant 0 : i32
    %c0_i32_2 = arith.constant 0 : i32
    return %c0_i32, %c0_i32_0, %c0_i32_1 : i32, i32, i32
  }
  func.func @transform_3(%arg0: i32) -> (i32, i32, i32, i32) {
    %c0_i32 = arith.constant 0 : i32
    %c0_i32_0 = arith.constant 0 : i32
    %c0_i32_1 = arith.constant 0 : i32
    %c0_i32_2 = arith.constant 0 : i32
    return %arg0, %c0_i32, %c0_i32_0, %c0_i32_1 : i32, i32, i32, i32
  }
  func.func @transform_4(%arg0: i32) -> (i32, i32, i32) {
    %c0_i32 = arith.constant 0 : i32
    %c0_i32_0 = arith.constant 0 : i32
    %c0_i32_1 = arith.constant 0 : i32
    return %arg0, %c0_i32, %c0_i32_0 : i32, i32, i32
  }
  func.func @transform_5(%arg0: i32) -> (i32, i32, i32) {
    %c0_i32 = arith.constant 0 : i32
    %c0_i32_0 = arith.constant 0 : i32
    %c0_i32_1 = arith.constant 0 : i32
    return %arg0, %c0_i32, %c0_i32_0 : i32, i32, i32
  }
}

</mosaic_0001>

<bundles_post_ra>
// kernel: tpu_custom_call.1
= control target key start
LH: loop header
LB: loop body
LE: loop exit
PB: predicated region body
PF: predicated region fallthrough
CT: control target
= control target key end

     0   :  { %11 = vsyncpa [#allocation3], 0  ;;  %s3245_s0 = inlined_call_operand.hbm [shape: f32[2,8,16,64], index: 0, kind: input, shape index: {}]   ;;  %s3246_s1 = inlined_call_operand.hbm [shape: f32[2,8,16,16], index: 1, kind: input, shape index: {}]   ;;  %s3247_s2 = inlined_call_operand.hbm [shape: f32[2,64,128], index: 2, kind: input, shape index: {}]   ;;  %s3248_s3 = inlined_call_operand.hbm [shape: f32[2,8,16,128], index: 3, kind: output, shape index: {0}]   ;;  %s3249_s4 = inlined_call_operand.hbm [shape: f32[1,1,128], index: 4, kind: output, shape index: {1}]   ;;  %s3250_s5 = inlined_call_operand.hbm [shape: f32[1,1,128], index: 5, kind: output, shape index: {2}]  }
   0x1   :  { %12 = vsyncpa [#allocation6], 0 }
   0x2   :  { %13 = vsyncpa [#allocation4], 0 }
   0x3   :  { %14 = vsyncpa [#allocation10], 0  ;;  %s2882_s18 = smov [#allocation5]   ;;  %s2883_s20 = smov [#allocation2]  }
   0x4   :  { %s32_s19 = sshll.u32 %s2882_s18, 4  ;;  %s20_s21 = sshll.u32 %s2883_s20, 4  ;;  %s33_s19 = int_to_ptr.vmem [resolvable:$true] %s32_s19  ;;  %s21_s21 = int_to_ptr.vmem [resolvable:$true] %s20_s21 }
   0x5   :  { %s2762_s22 = scalar_lea.vmem %s33_s19, 4096  ;;  %p2767_p1 = scmp.lt.s32.totalorder %s33_s19, %s33_s19 }
   0x6   :  { %p2763_p0 = scmp.ne.s32.totalorder %s33_s19, %s2762_s22  ;;  %p2768_p2 = scmp.lt.s32.totalorder %s2762_s22, %s2762_s22 }
   0x8   :  { %p2769_p3 = por %p2768_p2, %p2767_p1 }
   0xa   :  { %p2770_p4 = pnand %p2769_p3, %p2763_p0 }
   0xc   :  { %2773 = shalt.err (!%p2770_p4)
}
   0xd   :  { %s2884_s23 = smov 128   ;;  %s2885_s24 = smov 8  }
   0xe   :  { %38 = dma.hbm_to_vmem [thread:$0]  %s3246_s1, 4096, %s33_s19, [#allocation6], %s2884_s23, %s2884_s23, %s2885_s24  }
   0xf   :  { %s2782_s27 = scalar_lea.vmem %s21_s21, 4096  ;;  %p2787_p6 = scmp.lt.s32.totalorder %s21_s21, %s21_s21 }
  0x10   :  { %p2783_p5 = scmp.ne.s32.totalorder %s21_s21, %s2782_s27  ;;  %p2788_p7 = scmp.lt.s32.totalorder %s2782_s27, %s2782_s27 }
  0x12   :  { %p2789_p8 = por %p2788_p7, %p2787_p6 }
  0x14   :  { %p2790_p9 = pnand %p2789_p8, %p2783_p5 }
  0x16   :  { %2793 = shalt.err (!%p2790_p9)
}
  0x17   :  { %26 = dma.hbm_to_vmem [thread:$0]  %s3245_s0, 4096, %s21_s21, [#allocation3], %s2884_s23, %s2884_s23, %s2885_s24  }
  0x18   :  { %s2886_s30 = smov [#allocation7]  }
  0x19   :  { %s44_s6 = sshll.u32 %s2886_s30, 4  ;;  %s45_s6 = int_to_ptr.vmem [resolvable:$true] %s44_s6 }
  0x1a   :  { %s2802_s7 = scalar_lea.vmem %s45_s6, 2048  ;;  %p2807_p11 = scmp.lt.s32.totalorder %s45_s6, %s45_s6 }
  0x1b   :  { %p2803_p10 = scmp.ne.s32.totalorder %s45_s6, %s2802_s7  ;;  %p2808_p12 = scmp.lt.s32.totalorder %s2802_s7, %s2802_s7 }
  0x1d   :  { %p2809_p13 = por %p2808_p12, %p2807_p11 }
  0x1f   :  { %p2810_p0 = pnand %p2809_p13, %p2803_p10 }
  0x21   :  { %2813 = shalt.err (!%p2810_p0)
}
  0x22   :  { %50 = dma.hbm_to_vmem [thread:$0]  %s3247_s2, 2048, %s45_s6, [#allocation6], %s2884_s23, %s2884_s23, %s2885_s24  }
  0x23   :  { %2874 = dma.done.wait [#allocation3], 4096  }
  0x24   :  { %2875 = vsyncadd [#allocation3], 4294963200 }
  0x25   :  { %2876 = dma.done.wait [#allocation6], 6144  }
  0x26   :  { %2877 = vsyncadd [#allocation6], 4294961152  ;;  %vm124_vm0 = vcmask 130048   ;;  %v2938_v0 = vld [vmem:[#allocation2 + $0x8] sm:$0xff]  ;;  %v2940_v1 = vld [vmem:[#allocation2] sm:$0xff]  ;;  %vm1438_vm1 = vcmask 523264  }
  0x27   :  { %v2942_v2 = vld [vmem:[#allocation2 + $0x18] sm:$0xff]  ;;  %2506 = vmatprep.subr.mxu0 %v2938_v0  ;;  %v92_v3 = vld [vmem:[#allocation5] sm:$0xff]  ;;  %v2946_v4 = vld [vmem:[#allocation2 + $0x10] sm:$0xff]  ;;  %s2887_s0 = smov [#allocation8]  }
  0x28   :  { %2513 = vmatprep.subr.mxu1 %v2942_v2  ;;  %2507 = vmatpush3.msra.mxu0 %v2938_v0  ;;  %v93_v5 = vld [vmem:[#allocation5 + $0x8] sm:$0xff]  ;;  %v94_v6 = vld [vmem:[#allocation5 + $0x10] sm:$0xff]  ;;  %v95_v8 = vld [vmem:[#allocation5 + $0x18] sm:$0xff]  ;;  %s2226_s2 = sshll.u32 %s2887_s0, 4  ;;  %s2227_s2 = int_to_ptr.vmem [resolvable:$true] %s2226_s2 }
  0x29   :  { %2510 = vmatprep.mubr.msk.f32.mxu0 %vm124_vm0, %v92_v3  ;;  %2508 = vmatprep.subr.mxu0 %v2940_v1  ;;  %v2952_v7 = vld [vmem:[#allocation2 + $0x28] sm:$0xff]  ;;  %v2958_v9 = vld [vmem:[#allocation2 + $0x20] sm:$0xff]  ;;  %v2962_v11 = vld [vmem:[#allocation2 + $0x38] sm:$0xff]  ;;  %s2814_s9 = scalar_lea.vmem %s2227_s2, 4096  ;;  %p2819_p2 = scmp.lt.s32.totalorder %s2227_s2, %s2227_s2 }
  0x2a   :  { %2514 = vmatpush3.msra.mxu1 %v2942_v2  ;;  %2509 = vmatpush3.msra.mxu0 %v2940_v1  ;;  %v96_v10 = vld [vmem:[#allocation5 + $0x20] sm:$0xff]  ;;  %v97_v12 = vld [vmem:[#allocation5 + $0x28] sm:$0xff]  ;;  %v2968_v13 = vld [vmem:[#allocation2 + $0x30] sm:$0xff]  ;;  %p2815_p1 = scmp.ne.s32.totalorder %s2227_s2, %s2814_s9  ;;  %p2820_p3 = scmp.lt.s32.totalorder %s2814_s9, %s2814_s9 }
  0x2b   :  { %2515 = vmatprep.subr.mxu1 %v2946_v4  ;;  %2511 = vmatmul.mubr.msk.f32.vlgmr.msra.gmra.mxu0 %vm124_vm0, %v93_v5  ;;  %v98_v14 = vld [vmem:[#allocation5 + $0x30] sm:$0xff]  ;;  %v2972_v15 = vld [vmem:[#allocation2 + $0x48] sm:$0xff]  ;;  %v99_v16 = vld [vmem:[#allocation5 + $0x38] sm:$0xff] }
  0x2c   :  { %2516 = vmatpush3.msra.mxu1 %v2946_v4  ;;  %2517 = vmatprep.mubr.msk.f32.mxu1 %vm124_vm0, %v94_v6  ;;  %v2978_v17 = vld [vmem:[#allocation2 + $0x40] sm:$0xff]  ;;  %v2982_v19 = vld [vmem:[#allocation2 + $0x58] sm:$0xff]  ;;  %v101_v20 = vld [vmem:[#allocation5 + $0x48] sm:$0xff]  ;;  %p2821_p4 = por %p2820_p3, %p2819_p2 }
  0x2d   :  { %2520 = vmatprep.subr.mxu0 %v2952_v7  ;;  %2518 = vmatmul.mubr.msk.f32.vlgmr.msra.gmra.mxu1 %vm124_vm0, %v95_v8  ;;  %v100_v18 = vld [vmem:[#allocation5 + $0x40] sm:$0xff]  ;;  %v2988_v21 = vld [vmem:[#allocation2 + $0x50] sm:$0xff]  ;;  %v2992_v23 = vld [vmem:[#allocation2 + $0x68] sm:$0xff] }
  0x2e   :  { %2521 = vmatpush3.msra.mxu0 %v2952_v7  ;;  %2524 = vmatprep.mubr.msk.f32.mxu0 %vm124_vm0, %v96_v10  ;;  %v102_v22 = vld [vmem:[#allocation5 + $0x50] sm:$0xff]  ;;  %v103_v24 = vld [vmem:[#allocation5 + $0x58] sm:$0xff]  ;;  %v2998_v25 = vld [vmem:[#allocation2 + $0x60] sm:$0xff]  ;;  %p2822_p5 = pnand %p2821_p4, %p2815_p1 }
  0x2f   :  { %2522 = vmatprep.subr.mxu0 %v2958_v9  ;;  %2527 = vmatprep.subr.mxu1 %v2962_v11  ;;  %v104_v26 = vld [vmem:[#allocation5 + $0x60] sm:$0xff]  ;;  %v3002_v27 = vld [vmem:[#allocation2 + $0x78] sm:$0xff]  ;;  %v105_v28 = vld [vmem:[#allocation5 + $0x68] sm:$0xff] }
  0x30   :  { %2523 = vmatpush3.msra.mxu0 %v2958_v9  ;;  %2528 = vmatpush3.msra.mxu1 %v2962_v11  ;;  %v3008_v29 = vld [vmem:[#allocation2 + $0x70] sm:$0xff]  ;;  %v3012_v31 = vld [vmem:[#allocation2 + $0x88] sm:$0xff]  ;;  %v107_v32 = vld [vmem:[#allocation5 + $0x78] sm:$0xff] }
  0x31   :  { %2525 = vmatmul.mubr.msk.f32.vlgmr.msra.gmra.mxu0 %vm124_vm0, %v97_v12  ;;  %2529 = vmatprep.subr.mxu1 %v2968_v13  ;;  %v106_v30 = vld [vmem:[#allocation5 + $0x70] sm:$0xff]  ;;  %v3018_v33 = vld [vmem:[#allocation2 + $0x80] sm:$0xff]  ;;  %v3022_v35 = vld [vmem:[#allocation2 + $0x98] sm:$0xff] }
  0x32   :  { %2531 = vmatprep.mubr.msk.f32.mxu1 %vm124_vm0, %v98_v14  ;;  %2530 = vmatpush3.msra.mxu1 %v2968_v13  ;;  %v108_v34 = vld [vmem:[#allocation5 + $0x80] sm:$0xff]  ;;  %v109_v36 = vld [vmem:[#allocation5 + $0x88] sm:$0xff]  ;;  %v3028_v37 = vld [vmem:[#allocation2 + $0x90] sm:$0xff] }
  0x33   :  { %2534 = vmatprep.subr.mxu0 %v2972_v15  ;;  %2532 = vmatmul.mubr.msk.f32.vlgmr.msra.gmra.mxu1 %vm124_vm0, %v99_v16  ;;  %v110_v38 = vld [vmem:[#allocation5 + $0x90] sm:$0xff]  ;;  %v3032_v39 = vld [vmem:[#allocation2 + $0xa8] sm:$0xff]  ;;  %v111_v40 = vld [vmem:[#allocation5 + $0x98] sm:$0xff] }
  0x34   :  { %2535 = vmatpush3.msra.mxu0 %v2972_v15  ;;  %2538 = vmatprep.mubr.msk.f32.mxu0 %vm124_vm0, %v100_v18  ;;  %v3038_v41 = vld [vmem:[#allocation2 + $0xa0] sm:$0xff]  ;;  %v3042_v43 = vld [vmem:[#allocation2 + $0xb8] sm:$0xff]  ;;  %v113_v44 = vld [vmem:[#allocation5 + $0xa8] sm:$0xff] }
  0x35   :  { %2536 = vmatprep.subr.mxu0 %v2978_v17  ;;  %2541 = vmatprep.subr.mxu1 %v2982_v19  ;;  %v112_v42 = vld [vmem:[#allocation5 + $0xa0] sm:$0xff]  ;;  %v3048_v45 = vld [vmem:[#allocation2 + $0xb0] sm:$0xff]  ;;  %v3052_v47 = vld [vmem:[#allocation2 + $0xc8] sm:$0xff] }
  0x36   :  { %2537 = vmatpush3.msra.mxu0 %v2978_v17  ;;  %2542 = vmatpush3.msra.mxu1 %v2982_v19  ;;  %v114_v46 = vld [vmem:[#allocation5 + $0xb0] sm:$0xff]  ;;  %v115_v48 = vld [vmem:[#allocation5 + $0xb8] sm:$0xff]  ;;  %v3058_v49 = vld [vmem:[#allocation2 + $0xc0] sm:$0xff] }
  0x37   :  { %2539 = vmatmul.mubr.msk.f32.vlgmr.msra.gmra.mxu0 %vm124_vm0, %v101_v20  ;;  %2543 = vmatprep.subr.mxu1 %v2988_v21  ;;  %v116_v50 = vld [vmem:[#allocation5 + $0xc0] sm:$0xff]  ;;  %v3062_v51 = vld [vmem:[#allocation2 + $0xd8] sm:$0xff]  ;;  %v117_v52 = vld [vmem:[#allocation5 + $0xc8] sm:$0xff] }
  0x38   :  { %2545 = vmatprep.mubr.msk.f32.mxu1 %vm124_vm0, %v102_v22  ;;  %2544 = vmatpush3.msra.mxu1 %v2988_v21  ;;  %v3068_v53 = vld [vmem:[#allocation2 + $0xd0] sm:$0xff]  ;;  %v3072_v55 = vld [vmem:[#allocation2 + $0xe8] sm:$0xff]  ;;  %v119_v56 = vld [vmem:[#allocation5 + $0xd8] sm:$0xff] }
  0x39   :  { %2548 = vmatprep.subr.mxu0 %v2992_v23  ;;  %2546 = vmatmul.mubr.msk.f32.vlgmr.msra.gmra.mxu1 %vm124_vm0, %v103_v24  ;;  %v118_v54 = vld [vmem:[#allocation5 + $0xd0] sm:$0xff]  ;;  %v3078_v57 = vld [vmem:[#allocation2 + $0xe0] sm:$0xff]  ;;  %v3082_v59 = vld [vmem:[#allocation2 + $0xf8] sm:$0xff] }
  0x3a   :  { %2549 = vmatpush3.msra.mxu0 %v2992_v23  ;;  %2552 = vmatprep.mubr.msk.f32.mxu0 %vm124_vm0, %v104_v26  ;;  %v120_v58 = vld [vmem:[#allocation5 + $0xe0] sm:$0xff]  ;;  %v121_v60 = vld [vmem:[#allocation5 + $0xe8] sm:$0xff]  ;;  %v3088_v61 = vld [vmem:[#allocation2 + $0xf0] sm:$0xff] }
  0x3b   :  { %2550 = vmatprep.subr.mxu0 %v2998_v25  ;;  %2555 = vmatprep.subr.mxu1 %v3002_v27  ;;  %v122_v62 = vld [vmem:[#allocation5 + $0xf0] sm:$0xff]  ;;  %v1437_v63 = vld [vmem:[#allocation7 + $0x78] sm:$0xff]  ;;  %v1435_v8 = vld [vmem:[#allocation7 + $0x68] sm:$0xff] }
  0x3c   :  { %2551 = vmatpush3.msra.mxu0 %v2998_v25  ;;  %2556 = vmatpush3.msra.mxu1 %v3002_v27  ;;  %v123_v3 = vld [vmem:[#allocation5 + $0xf8] sm:$0xff]  ;;  %v1436_v5 = vld [vmem:[#allocation7 + $0x70] sm:$0xff]  ;;  %v1434_v12 = vld [vmem:[#allocation7 + $0x60] sm:$0xff] }
  0x3d   :  { %2553 = vmatmul.mubr.msk.f32.vlgmr.msra.gmra.mxu0 %vm124_vm0, %v105_v28  ;;  %2557 = vmatprep.subr.mxu1 %v3008_v29  ;;  %v1428_v6 = vld [vmem:[#allocation7 + $0x38] sm:$0xff]  ;;  %v1427_v10 = vld [vmem:[#allocation7 + $0x30] sm:$0xff]  ;;  %v1426_v14 = vld [vmem:[#allocation7 + $0x28] sm:$0xff] }
  0x3e   :  { %2559 = vmatprep.mubr.msk.f32.mxu1 %vm124_vm0, %v106_v30  ;;  %2558 = vmatpush3.msra.mxu1 %v3008_v29  ;;  %v1433_v16 = vld [vmem:[#allocation7 + $0x58] sm:$0xff]  ;;  %v1425_v18 = vld [vmem:[#allocation7 + $0x20] sm:$0xff]  ;;  %v1432_v20 = vld [vmem:[#allocation7 + $0x50] sm:$0xff] }
  0x3f   :  { %2562 = vmatprep.subr.mxu0 %v3012_v31  ;;  %2560 = vmatmul.mubr.msk.f32.vlgmr.msra.gmra.mxu1 %vm124_vm0, %v107_v32  ;;  %v1424_v22 = vld [vmem:[#allocation7 + $0x18] sm:$0xff]  ;;  %v1431_v24 = vld [vmem:[#allocation7 + $0x48] sm:$0xff]  ;;  %v1423_v26 = vld [vmem:[#allocation7 + $0x10] sm:$0xff] }
  0x40   :  { %2563 = vmatpush3.msra.mxu0 %v3012_v31  ;;  %2566 = vmatprep.mubr.msk.f32.mxu0 %vm124_vm0, %v108_v34  ;;  %v1430_v28 = vld [vmem:[#allocation7 + $0x40] sm:$0xff]  ;;  %v1422_v30 = vld [vmem:[#allocation7 + $0x8] sm:$0xff] }
  0x41   :  { %2564 = vmatprep.subr.mxu0 %v3018_v33  ;;  %2569 = vmatprep.subr.mxu1 %v3022_v35  ;;  %v1421_v32 = vld [vmem:[#allocation7] sm:$0xff] }
  0x42   :  { %2565 = vmatpush3.msra.mxu0 %v3018_v33  ;;  %2570 = vmatpush3.msra.mxu1 %v3022_v35 }
  0x43   :  { %2567 = vmatmul.mubr.msk.f32.vlgmr.msra.gmra.mxu0 %vm124_vm0, %v109_v36  ;;  %2571 = vmatprep.subr.mxu1 %v3028_v37 }
  0x44   :  { %2573 = vmatprep.mubr.msk.f32.mxu1 %vm124_vm0, %v110_v38  ;;  %2572 = vmatpush3.msra.mxu1 %v3028_v37 }
  0x45   :  { %2576 = vmatprep.subr.mxu0 %v3032_v39  ;;  %2574 = vmatmul.mubr.msk.f32.vlgmr.msra.gmra.mxu1 %vm124_vm0, %v111_v40 }
  0x46   :  { %2577 = vmatpush3.msra.mxu0 %v3032_v39  ;;  %2580 = vmatprep.mubr.msk.f32.mxu0 %vm124_vm0, %v112_v42 }
  0x47   :  { %2578 = vmatprep.subr.mxu0 %v3038_v41  ;;  %2583 = vmatprep.subr.mxu1 %v3042_v43 }
  0x48   :  { %2579 = vmatpush3.msra.mxu0 %v3038_v41  ;;  %2584 = vmatpush3.msra.mxu1 %v3042_v43 }
  0x49   :  { %2581 = vmatmul.mubr.msk.f32.vlgmr.msra.gmra.mxu0 %vm124_vm0, %v113_v44  ;;  %2585 = vmatprep.subr.mxu1 %v3048_v45 }
  0x4a   :  { %2587 = vmatprep.mubr.msk.f32.mxu1 %vm124_vm0, %v114_v46  ;;  %2586 = vmatpush3.msra.mxu1 %v3048_v45 }
  0x4b   :  { %2590 = vmatprep.subr.mxu0 %v3052_v47  ;;  %2588 = vmatmul.mubr.msk.f32.vlgmr.msra.gmra.mxu1 %vm124_vm0, %v115_v48 }
  0x4c   :  { %2591 = vmatpush3.msra.mxu0 %v3052_v47  ;;  %2594 = vmatprep.mubr.msk.f32.mxu0 %vm124_vm0, %v116_v50 }
  0x4d   :  { %2592 = vmatprep.subr.mxu0 %v3058_v49  ;;  %2597 = vmatprep.subr.mxu1 %v3062_v51 }
  0x4e   :  { %2593 = vmatpush3.msra.mxu0 %v3058_v49  ;;  %2598 = vmatpush3.msra.mxu1 %v3062_v51 }
  0x4f   :  { %2595 = vmatmul.mubr.msk.f32.vlgmr.msra.gmra.mxu0 %vm124_vm0, %v117_v52  ;;  %2599 = vmatprep.subr.mxu1 %v3068_v53 }
  0x50   :  { %2601 = vmatprep.mubr.msk.f32.mxu1 %vm124_vm0, %v118_v54  ;;  %2600 = vmatpush3.msra.mxu1 %v3068_v53 }
  0x51   :  { %2604 = vmatprep.subr.mxu0 %v3072_v55  ;;  %2602 = vmatmul.mubr.msk.f32.vlgmr.msra.gmra.mxu1 %vm124_vm0, %v119_v56 }
  0x52   :  { %2605 = vmatpush3.msra.mxu0 %v3072_v55  ;;  %2608 = vmatprep.mubr.msk.f32.mxu0 %vm124_vm0, %v120_v58 }
  0x53   :  { %2606 = vmatprep.subr.mxu0 %v3078_v57  ;;  %2611 = vmatprep.subr.mxu1 %v3082_v59 }
  0x54   :  { %2607 = vmatpush3.msra.mxu0 %v3078_v57  ;;  %2612 = vmatpush3.msra.mxu1 %v3082_v59 }
  0x55   :  { %2609 = vmatmul.mubr.msk.f32.vlgmr.msra.gmra.mxu0 %vm124_vm0, %v121_v60  ;;  %2613 = vmatprep.subr.mxu1 %v3088_v61 }
  0x56   :  { %2615 = vmatprep.mubr.msk.f32.mxu1 %vm124_vm0, %v122_v62  ;;  %2614 = vmatpush3.msra.mxu1 %v3088_v61 }
  0x57   :  { %2618 = vmatprep.subr.mxu0 %v1437_v63  ;;  %2616 = vmatmul.mubr.msk.f32.vlgmr.msra.gmra.mxu1 %vm124_vm0, %v123_v3 }
  0x58   :  { %2619 = vmatpush3.msra.mxu0 %v1437_v63  ;;  %2682 = vmatprep.subr.mxu1 %v1428_v6 }
  0x59   :  { %2620 = vmatprep.subr.mxu0 %v1436_v5  ;;  %2683 = vmatpush3.msra.mxu1 %v1428_v6 }
  0x5a   :  { %2621 = vmatpush3.msra.mxu0 %v1436_v5  ;;  %2684 = vmatprep.subr.mxu1 %v1427_v10 }
  0x5b   :  { %2622 = vmatprep.subr.mxu0 %v1435_v8  ;;  %2685 = vmatpush3.msra.mxu1 %v1427_v10 }
  0x5c   :  { %2623 = vmatpush3.msra.mxu0 %v1435_v8  ;;  %2686 = vmatprep.subr.mxu1 %v1426_v14 }
  0x5d   :  { %2624 = vmatprep.subr.mxu0 %v1434_v12  ;;  %2687 = vmatpush3.msra.mxu1 %v1426_v14 }
  0x5e   :  { %2625 = vmatpush3.msra.mxu0 %v1434_v12  ;;  %2688 = vmatprep.subr.mxu1 %v1425_v18 }
  0x5f   :  { %2626 = vmatprep.subr.mxu0 %v1433_v16  ;;  %2689 = vmatpush3.msra.mxu1 %v1425_v18 }
  0x60   :  { %2627 = vmatpush3.msra.mxu0 %v1433_v16  ;;  %2690 = vmatprep.subr.mxu1 %v1424_v22 }
  0x61   :  { %2628 = vmatprep.subr.mxu0 %v1432_v20  ;;  %2691 = vmatpush3.msra.mxu1 %v1424_v22 }
  0x62   :  { %2629 = vmatpush3.msra.mxu0 %v1432_v20  ;;  %2692 = vmatprep.subr.mxu1 %v1423_v26 }
  0x63   :  { %2630 = vmatprep.subr.mxu0 %v1431_v24  ;;  %2693 = vmatpush3.msra.mxu1 %v1423_v26 }
  0x64   :  { %2631 = vmatpush3.msra.mxu0 %v1431_v24  ;;  %2694 = vmatprep.subr.mxu1 %v1422_v30 }
  0x65   :  { %2632 = vmatprep.subr.mxu0 %v1430_v28  ;;  %2634 = vmatprep.mubr.msk.f32.mxu0 %vm1438_vm1, %v2940_v1 }
  0x66   :  { %2633 = vmatpush3.msra.mxu0 %v1430_v28  ;;  %2695 = vmatpush3.msra.mxu1 %v1422_v30 }
  0x67   :  { %2635 = vmatmul.mubr.msk.f32.vlgmr.msra.gmra.mxu0 %vm1438_vm1, %v2938_v0  ;;  %2696 = vmatprep.subr.mxu1 %v1421_v32 }
  0x68   :  { %2637 = vmatprep.mubr.msk.f32.mxu0 %vm1438_vm1, %v2946_v4  ;;  %2697 = vmatpush3.msra.mxu1 %v1421_v32 }
  0x6b   :  { %2638 = vmatmul.mubr.msk.f32.gmra.mxu0 %vm1438_vm1, %v2942_v2 }
  0x6c   :  { %2640 = vmatprep.mubr.msk.f32.mxu0 %vm1438_vm1, %v2958_v9 }
  0x6f   :  { %2641 = vmatmul.mubr.msk.f32.gmra.mxu0 %vm1438_vm1, %v2952_v7 }
  0x70   :  { %2643 = vmatprep.mubr.msk.f32.mxu0 %vm1438_vm1, %v2968_v13 }
  0x73   :  { %2644 = vmatmul.mubr.msk.f32.gmra.mxu0 %vm1438_vm1, %v2962_v11 }
  0x74   :  { %2646 = vmatprep.mubr.msk.f32.mxu0 %vm1438_vm1, %v2978_v17 }
  0x77   :  { %2647 = vmatmul.mubr.msk.f32.gmra.mxu0 %vm1438_vm1, %v2972_v15 }
  0x78   :  { %2649 = vmatprep.mubr.msk.f32.mxu0 %vm1438_vm1, %v2988_v21 }
  0x7b   :  { %2650 = vmatmul.mubr.msk.f32.gmra.mxu0 %vm1438_vm1, %v2982_v19 }
  0x7c   :  { %2652 = vmatprep.mubr.msk.f32.mxu0 %vm1438_vm1, %v2998_v25 }
  0x7f   :  { %2653 = vmatmul.mubr.msk.f32.gmra.mxu0 %vm1438_vm1, %v2992_v23 }
  0x80   :  { %2655 = vmatprep.mubr.msk.f32.mxu0 %vm1438_vm1, %v3008_v29 }
  0x83   :  { %2656 = vmatmul.mubr.msk.f32.gmra.mxu0 %vm1438_vm1, %v3002_v27 }
  0x84   :  { %2658 = vmatprep.mubr.msk.f32.mxu0 %vm1438_vm1, %v3018_v33 }
  0x87   :  { %2659 = vmatmul.mubr.msk.f32.gmra.mxu0 %vm1438_vm1, %v3012_v31 }
  0x88   :  { %2661 = vmatprep.mubr.msk.f32.mxu0 %vm1438_vm1, %v3028_v37 }
  0x8b   :  { %2662 = vmatmul.mubr.msk.f32.gmra.mxu0 %vm1438_vm1, %v3022_v35 }
  0x8c   :  { %2664 = vmatprep.mubr.msk.f32.mxu0 %vm1438_vm1, %v3038_v41 }
  0x8f   :  { %2665 = vmatmul.mubr.msk.f32.gmra.mxu0 %vm1438_vm1, %v3032_v39 }
  0x90   :  { %2667 = vmatprep.mubr.msk.f32.mxu0 %vm1438_vm1, %v3048_v45 }
  0x93   :  { %2668 = vmatmul.mubr.msk.f32.gmra.mxu0 %vm1438_vm1, %v3042_v43 }
  0x94   :  { %2670 = vmatprep.mubr.msk.f32.mxu0 %vm1438_vm1, %v3058_v49 }
  0x97   :  { %2671 = vmatmul.mubr.msk.f32.gmra.mxu0 %vm1438_vm1, %v3052_v47 }
  0x98   :  { %2673 = vmatprep.mubr.msk.f32.mxu0 %vm1438_vm1, %v3068_v53 }
  0x9b   :  { %2674 = vmatmul.mubr.msk.f32.gmra.mxu0 %vm1438_vm1, %v3062_v51 }
  0x9c   :  { %2676 = vmatprep.mubr.msk.f32.mxu0 %vm1438_vm1, %v3078_v57 }
  0x9f   :  { %2677 = vmatmul.mubr.msk.f32.gmra.mxu0 %vm1438_vm1, %v3072_v55 }
  0xa0   :  { %2679 = vmatprep.mubr.msk.f32.mxu0 %vm1438_vm1, %v3088_v61 }
  0xa3   :  { %2680 = vmatmul.mubr.msk.f32.gmra.mxu0 %vm1438_vm1, %v3082_v59 }
  0xeb   :  { %v2512_v0 = vpop.f32.mrf.mxu0 }
  0xed   :  { %v197_v1 = vpop.f32.mrf.mxu0  ;;  %v2519_v2 = vpop.f32.mrf.mxu1 }
  0xee   :  { %2698 = vmatprep.mubr.msk.f32.mxu1 %vm1438_vm1, %v197_v1 }
  0xef   :  { %v278_v4 = vpop.f32.mrf.mxu1  ;;  %2699 = vmatmul.mubr.msk.f32.vlgmr.msra.gmra.mxu1 %vm1438_vm1, %v2512_v0 }
  0xf0   :  { %2701 = vmatprep.mubr.msk.f32.mxu1 %vm1438_vm1, %v278_v4 }
  0xf1   :  { %v2526_v7 = vpop.f32.mrf.mxu0 }
  0xf3   :  { %v359_v9 = vpop.f32.mrf.mxu0  ;;  %2702 = vmatmul.mubr.msk.f32.gmra.mxu1 %vm1438_vm1, %v2519_v2  ;;  %v2533_v11 = vpop.f32.mrf.mxu1 }
  0xf4   :  { %2704 = vmatprep.mubr.msk.f32.mxu1 %vm1438_vm1, %v359_v9 }
  0xf5   :  { %v440_v13 = vpop.f32.mrf.mxu1 }
  0xf7   :  { %v2540_v15 = vpop.f32.mrf.mxu0  ;;  %2705 = vmatmul.mubr.msk.f32.gmra.mxu1 %vm1438_vm1, %v2526_v7 }
  0xf8   :  { %2707 = vmatprep.mubr.msk.f32.mxu1 %vm1438_vm1, %v440_v13 }
  0xf9   :  { %v521_v17 = vpop.f32.mrf.mxu0  ;;  %v2547_v19 = vpop.f32.mrf.mxu1 }
  0xfb   :  { %2708 = vmatmul.mubr.msk.f32.gmra.mxu1 %vm1438_vm1, %v2533_v11  ;;  %v602_v21 = vpop.f32.mrf.mxu1 }
  0xfc   :  { %2710 = vmatprep.mubr.msk.f32.mxu1 %vm1438_vm1, %v521_v17 }
  0xfd   :  { %v2554_v23 = vpop.f32.mrf.mxu0 }
  0xff   :  { %2711 = vmatmul.mubr.msk.f32.gmra.mxu1 %vm1438_vm1, %v2540_v15  ;;  %v683_v25 = vpop.f32.mrf.mxu0  ;;  %v2561_v27 = vpop.f32.mrf.mxu1 }
 0x100   :  { %2713 = vmatprep.mubr.msk.f32.mxu1 %vm1438_vm1, %v602_v21 }
 0x101   :  { %v764_v29 = vpop.f32.mrf.mxu1 }
 0x103   :  { %2714 = vmatmul.mubr.msk.f32.gmra.mxu1 %vm1438_vm1, %v2547_v19  ;;  %v2568_v31 = vpop.f32.mrf.mxu0 }
 0x104   :  { %2716 = vmatprep.mubr.msk.f32.mxu1 %vm1438_vm1, %v683_v25 }
 0x105   :  { %v845_v33 = vpop.f32.mrf.mxu0  ;;  %v2575_v34 = vpop.f32.mrf.mxu1 }
 0x107   :  { %2717 = vmatmul.mubr.msk.f32.gmra.mxu1 %vm1438_vm1, %v2554_v23  ;;  %v926_v35 = vpop.f32.mrf.mxu1 }
 0x108   :  { %2719 = vmatprep.mubr.msk.f32.mxu1 %vm1438_vm1, %v764_v29 }
 0x109   :  { %v2582_v36 = vpop.f32.mrf.mxu0 }
 0x10b   :  { %2720 = vmatmul.mubr.msk.f32.gmra.mxu1 %vm1438_vm1, %v2561_v27  ;;  %v1007_v37 = vpop.f32.mrf.mxu0  ;;  %v2589_v38 = vpop.f32.mrf.mxu1 }
 0x10c   :  { %2722 = vmatprep.mubr.msk.f32.mxu1 %vm1438_vm1, %v845_v33 }
 0x10d   :  { %v1088_v39 = vpop.f32.mrf.mxu1 }
 0x10f   :  { %2723 = vmatmul.mubr.msk.f32.gmra.mxu1 %vm1438_vm1, %v2568_v31  ;;  %v2596_v40 = vpop.f32.mrf.mxu0 }
 0x110   :  { %2725 = vmatprep.mubr.msk.f32.mxu1 %vm1438_vm1, %v926_v35 }
 0x111   :  { %v1169_v41 = vpop.f32.mrf.mxu0  ;;  %v2603_v42 = vpop.f32.mrf.mxu1 }
 0x113   :  { %2726 = vmatmul.mubr.msk.f32.gmra.mxu1 %vm1438_vm1, %v2575_v34  ;;  %v1250_v43 = vpop.f32.mrf.mxu1 }
 0x114   :  { %2728 = vmatprep.mubr.msk.f32.mxu1 %vm1438_vm1, %v1007_v37 }
 0x115   :  { %v2610_v44 = vpop.f32.mrf.mxu0 }
 0x117   :  { %2729 = vmatmul.mubr.msk.f32.gmra.mxu1 %vm1438_vm1, %v2582_v36  ;;  %v1331_v45 = vpop.f32.mrf.mxu0  ;;  %v2617_v46 = vpop.f32.mrf.mxu1 }
 0x118   :  { %2731 = vmatprep.mubr.msk.f32.mxu1 %vm1438_vm1, %v1088_v39 }
 0x119   :  { %v1412_v47 = vpop.f32.mrf.mxu1 }
 0x11b   :  { %2732 = vmatmul.mubr.msk.f32.gmra.mxu1 %vm1438_vm1, %v2589_v38 }
 0x11c   :  { %2734 = vmatprep.mubr.msk.f32.mxu1 %vm1438_vm1, %v1169_v41 }
 0x11f   :  { %2735 = vmatmul.mubr.msk.f32.gmra.mxu1 %vm1438_vm1, %v2596_v40 }
 0x120   :  { %2737 = vmatprep.mubr.msk.f32.mxu1 %vm1438_vm1, %v1250_v43 }
 0x123   :  { %2738 = vmatmul.mubr.msk.f32.gmra.mxu1 %vm1438_vm1, %v2603_v42 }
 0x124   :  { %2740 = vmatprep.mubr.msk.f32.mxu1 %vm1438_vm1, %v1331_v45 }
 0x127   :  { %2741 = vmatmul.mubr.msk.f32.gmra.mxu1 %vm1438_vm1, %v2610_v44  ;;  %v2636_v48 = vpop.f32.mrf.mxu0 }
 0x128   :  { %2743 = vmatprep.mubr.msk.f32.mxu1 %vm1438_vm1, %v1412_v47 }
 0x129   :  { %v1601_v49 = vpop.f32.mrf.mxu0 }
 0x12b   :  { %2744 = vmatmul.mubr.msk.f32.gmra.mxu1 %vm1438_vm1, %v2617_v46  ;;  %v2639_v50 = vpop.f32.mrf.mxu0 }
 0x12d   :  { %v1611_v51 = vpop.f32.mrf.mxu0 }
 0x12f   :  { %v2642_v52 = vpop.f32.mrf.mxu0 }
 0x131   :  { %v1621_v53 = vpop.f32.mrf.mxu0 }
 0x133   :  { %v2645_v54 = vpop.f32.mrf.mxu0 }
 0x135   :  { %v1631_v55 = vpop.f32.mrf.mxu0 }
 0x137   :  { %v2648_v56 = vpop.f32.mrf.mxu0 }
 0x139   :  { %v1641_v57 = vpop.f32.mrf.mxu0 }
 0x13b   :  { %v3194_v58 = vpop.f32.mrf.mxu0 }
 0x13d   :  { %v3196_v59 = vpop.f32.mrf.mxu0 }
 0x13f   :  { %v3198_v60 = vpop.f32.mrf.mxu0 }
 0x141   :  { %v3200_v61 = vpop.f32.mrf.mxu0 }
 0x143   :  { %v3202_v62 = vpop.f32.mrf.mxu0 }
 0x145   :  { %v3204_v63 = vpop.f32.mrf.mxu0 }
 0x147   :  { %v3206_v8 = vpop.f32.mrf.mxu0 }
 0x149   :  { %v3208_v20 = vpop.f32.mrf.mxu0 }
 0x14b   :  { %v3210_v4 = vpop.f32.mrf.mxu0 }
 0x14d   :  { %v3212_v27 = vpop.f32.mrf.mxu0 }
 0x14f   :  { %v3214_v41 = vpop.f32.mrf.mxu0 }
 0x1af   :  { %v2700_v3 = vpop.f32.mrf.mxu1 }
 0x1b0   :  { %v1928_v5 = vadd.f32 %v2700_v3, %v2636_v48 }
 0x1b1   :  { %v1922_v6 = vpop.f32.mrf.mxu1 }
 0x1b2   :  { %2082 = vst [vmem:[#allocation8 + $0x8] sm:$0xff] %v1928_v5  ;;  %v1923_v10 = vadd.f32 %v1922_v6, %v1601_v49  ;;  %v2152_v22 = vmul.f32 %v1928_v5, %v1928_v5 }
 0x1b3   :  { %v2703_v12 = vpop.f32.mrf.mxu1 }
 0x1b4   :  { %2081 = vst [vmem:[#allocation8] sm:$0xff] %v1923_v10  ;;  %v2151_v14 = vmul.f32 %v1923_v10, %v1923_v10  ;;  %v1938_v16 = vadd.f32 %v2703_v12, %v2639_v50  ;;  %v2113_v24 = vadd.f32 %v1928_v5, %v1923_v10 }
 0x1b5   :  { %v1932_v18 = vpop.f32.mrf.mxu1 }
 0x1b6   :  { %2084 = vst [vmem:[#allocation8 + $0x18] sm:$0xff] %v1938_v16  ;;  %v1933_v26 = vadd.f32 %v1932_v18, %v1611_v51  ;;  %v2183_v30 = vadd.f32 %v2152_v22, %v2151_v14  ;;  %v2154_v7 = vmul.f32 %v1938_v16, %v1938_v16 }
 0x1b7   :  { %v2706_v28 = vpop.f32.mrf.mxu1 }
 0x1b8   :  { %2083 = vst [vmem:[#allocation8 + $0x10] sm:$0xff] %v1933_v26  ;;  %v2114_v32 = vadd.f32 %v2113_v24, %v1933_v26  ;;  %v2153_v0 = vmul.f32 %v1933_v26, %v1933_v26  ;;  %v1948_v1 = vadd.f32 %v2706_v28, %v2642_v52  ;;  %v3217_v52 = vpop.f32.mrf.mxu0 }
 0x1b9   :  { %v1942_v2 = vpop.f32.mrf.mxu1 }
 0x1ba   :  { %v2184_v9 = vadd.f32 %v2183_v30, %v2153_v0  ;;  %2086 = vst [vmem:[#allocation8 + $0x28] sm:$0xff] %v1948_v1  ;;  %v1943_v11 = vadd.f32 %v1942_v2, %v1621_v53  ;;  %v2115_v13 = vadd.f32 %v2114_v32, %v1938_v16  ;;  %v2156_v29 = vmul.f32 %v1948_v1, %v1948_v1  ;;  %v3221_v14 = vpop.f32.mrf.mxu0 }
 0x1bb   :  { %v2709_v15 = vpop.f32.mrf.mxu1 }
 0x1bc   :  { %2085 = vst [vmem:[#allocation8 + $0x20] sm:$0xff] %v1943_v11  ;;  %v2116_v17 = vadd.f32 %v2115_v13, %v1943_v11  ;;  %v2155_v19 = vmul.f32 %v1943_v11, %v1943_v11  ;;  %v2185_v21 = vadd.f32 %v2184_v9, %v2154_v7  ;;  %v1958_v23 = vadd.f32 %v2709_v15, %v2645_v54  ;;  %v1711_v0 = vpop.f32.mrf.mxu0 }
 0x1bd   :  { %v1952_v25 = vpop.f32.mrf.mxu1 }
 0x1be   :  { %v2186_v31 = vadd.f32 %v2185_v21, %v2155_v19  ;;  %2088 = vst [vmem:[#allocation8 + $0x38] sm:$0xff] %v1958_v23  ;;  %v1953_v33 = vadd.f32 %v1952_v25, %v1631_v55  ;;  %v2117_v34 = vadd.f32 %v2116_v17, %v1948_v1  ;;  %v2158_v42 = vmul.f32 %v1958_v23, %v1958_v23  ;;  %v2672_v19 = vpop.f32.mrf.mxu0 }
 0x1bf   :  { %v2712_v35 = vpop.f32.mrf.mxu1 }
 0x1c0   :  { %2087 = vst [vmem:[#allocation8 + $0x30] sm:$0xff] %v1953_v33  ;;  %v2118_v36 = vadd.f32 %v2117_v34, %v1953_v33  ;;  %v2157_v37 = vmul.f32 %v1953_v33, %v1953_v33  ;;  %v2187_v38 = vadd.f32 %v2186_v31, %v2156_v29  ;;  %v1968_v39 = vadd.f32 %v2712_v35, %v2648_v56 }
 0x1c1   :  { %v1962_v40 = vpop.f32.mrf.mxu1 }
 0x1c2   :  { %v2188_v43 = vadd.f32 %v2187_v38, %v2157_v37  ;;  %2090 = vst [vmem:[#allocation8 + $0x48] sm:$0xff] %v1968_v39  ;;  %v1963_v44 = vadd.f32 %v1962_v40, %v1641_v57  ;;  %v2119_v45 = vadd.f32 %v2118_v36, %v1958_v23  ;;  %v2160_v53 = vmul.f32 %v1968_v39, %v1968_v39  ;;  %v1721_v36 = vpop.f32.mrf.mxu0 }
 0x1c3   :  { %v2715_v46 = vpop.f32.mrf.mxu1 }
 0x1c4   :  { %2089 = vst [vmem:[#allocation8 + $0x40] sm:$0xff] %v1963_v44  ;;  %v2120_v47 = vadd.f32 %v2119_v45, %v1963_v44  ;;  %v2159_v48 = vmul.f32 %v1963_v44, %v1963_v44  ;;  %v2189_v49 = vadd.f32 %v2188_v43, %v2158_v42  ;;  %v1978_v50 = vadd.f32 %v2715_v46, %v3194_v58  ;;  %v2675_v46 = vpop.f32.mrf.mxu0 }
 0x1c5   :  { %v1972_v51 = vpop.f32.mrf.mxu1 }
 0x1c6   :  { %v2190_v54 = vadd.f32 %v2189_v49, %v2159_v48  ;;  %2092 = vst [vmem:[#allocation8 + $0x58] sm:$0xff] %v1978_v50  ;;  %v1973_v55 = vadd.f32 %v1972_v51, %v3196_v59  ;;  %v2121_v56 = vadd.f32 %v2120_v47, %v1968_v39  ;;  %v2162_v58 = vmul.f32 %v1978_v50, %v1978_v50 }
 0x1c7   :  { %v2718_v3 = vpop.f32.mrf.mxu1 }
 0x1c8   :  { %2091 = vst [vmem:[#allocation8 + $0x50] sm:$0xff] %v1973_v55  ;;  %v2122_v57 = vadd.f32 %v2121_v56, %v1973_v55  ;;  %v2161_v5 = vmul.f32 %v1973_v55, %v1973_v55  ;;  %v2191_v6 = vadd.f32 %v2190_v54, %v2160_v53  ;;  %v1988_v10 = vadd.f32 %v2718_v3, %v3198_v60  ;;  %v1731_v56 = vpop.f32.mrf.mxu0 }
 0x1c9   :  { %v1982_v12 = vpop.f32.mrf.mxu1 }
 0x1ca   :  { %v2192_v16 = vadd.f32 %v2191_v6, %v2161_v5  ;;  %2094 = vst [vmem:[#allocation8 + $0x68] sm:$0xff] %v1988_v10  ;;  %v1983_v18 = vadd.f32 %v1982_v12, %v3200_v61  ;;  %v2123_v22 = vadd.f32 %v2122_v57, %v1978_v50  ;;  %v2164_v1 = vmul.f32 %v1988_v10, %v1988_v10 }
 0x1cb   :  { %v2721_v24 = vpop.f32.mrf.mxu1 }
 0x1cc   :  { %2093 = vst [vmem:[#allocation8 + $0x60] sm:$0xff] %v1983_v18  ;;  %v2124_v59 = vadd.f32 %v2123_v22, %v1983_v18  ;;  %v2163_v26 = vmul.f32 %v1983_v18, %v1983_v18  ;;  %v2193_v28 = vadd.f32 %v2192_v16, %v2162_v58  ;;  %v1998_v30 = vadd.f32 %v2721_v24, %v3202_v62  ;;  %v2678_v18 = vpop.f32.mrf.mxu0 }
 0x1cd   :  { %v1992_v32 = vpop.f32.mrf.mxu1 }
 0x1ce   :  { %v2194_v60 = vadd.f32 %v2193_v28, %v2163_v26  ;;  %2096 = vst [vmem:[#allocation8 + $0x78] sm:$0xff] %v1998_v30  ;;  %v1993_v2 = vadd.f32 %v1992_v32, %v3204_v63  ;;  %v2125_v7 = vadd.f32 %v2124_v59, %v1988_v10  ;;  %v2166_v21 = vmul.f32 %v1998_v30, %v1998_v30 }
 0x1cf   :  { %v2724_v9 = vpop.f32.mrf.mxu1 }
 0x1d0   :  { %2095 = vst [vmem:[#allocation8 + $0x70] sm:$0xff] %v1993_v2  ;;  %v2126_v11 = vadd.f32 %v2125_v7, %v1993_v2  ;;  %v2165_v61 = vmul.f32 %v1993_v2, %v1993_v2  ;;  %v2195_v13 = vadd.f32 %v2194_v60, %v2164_v1  ;;  %v2008_v15 = vadd.f32 %v2724_v9, %v3206_v8  ;;  %v1741_v60 = vpop.f32.mrf.mxu0 }
 0x1d1   :  { %v2002_v17 = vpop.f32.mrf.mxu1 }
 0x1d2   :  { %v2196_v23 = vadd.f32 %v2195_v13, %v2165_v61  ;;  %2098 = vst [vmem:[#allocation8 + $0x88] sm:$0xff] %v2008_v15  ;;  %v2003_v62 = vadd.f32 %v2002_v17, %v3208_v20  ;;  %v2127_v25 = vadd.f32 %v2126_v11, %v1998_v30  ;;  %v2168_v37 = vmul.f32 %v2008_v15, %v2008_v15 }
 0x1d3   :  { %v2727_v29 = vpop.f32.mrf.mxu1 }
 0x1d4   :  { %2097 = vst [vmem:[#allocation8 + $0x80] sm:$0xff] %v2003_v62  ;;  %v2128_v31 = vadd.f32 %v2127_v25, %v2003_v62  ;;  %v2167_v63 = vmul.f32 %v2003_v62, %v2003_v62  ;;  %v2197_v33 = vadd.f32 %v2196_v23, %v2166_v21  ;;  %v2018_v34 = vadd.f32 %v2727_v29, %v3210_v4  ;;  %v2681_v21 = vpop.f32.mrf.mxu0 }
 0x1d5   :  { %v2012_v35 = vpop.f32.mrf.mxu1 }
 0x1d6   :  { %v2198_v38 = vadd.f32 %v2197_v33, %v2167_v63  ;;  %2100 = vst [vmem:[#allocation8 + $0x98] sm:$0xff] %v2018_v34  ;;  %v2013_v8 = vadd.f32 %v2012_v35, %v3212_v27  ;;  %v2129_v39 = vadd.f32 %v2128_v31, %v2008_v15  ;;  %v2170_v47 = vmul.f32 %v2018_v34, %v2018_v34 }
 0x1d7   :  { %v2730_v40 = vpop.f32.mrf.mxu1 }
 0x1d8   :  { %2099 = vst [vmem:[#allocation8 + $0x90] sm:$0xff] %v2013_v8  ;;  %v2130_v42 = vadd.f32 %v2129_v39, %v2013_v8  ;;  %v2169_v20 = vmul.f32 %v2013_v8, %v2013_v8  ;;  %v2199_v43 = vadd.f32 %v2198_v38, %v2168_v37  ;;  %v2028_v44 = vadd.f32 %v2730_v40, %v3214_v41  ;;  %v1751_v37 = vpop.f32.mrf.mxu0 }
 0x1d9   :  { %v2022_v45 = vpop.f32.mrf.mxu1 }
 0x1da   :  { %v2200_v48 = vadd.f32 %v2199_v43, %v2169_v20  ;;  %2102 = vst [vmem:[#allocation8 + $0xa8] sm:$0xff] %v2028_v44  ;;  %v2023_v4 = vadd.f32 %v2022_v45, %v3217_v52  ;;  %v2131_v49 = vadd.f32 %v2130_v42, %v2018_v34  ;;  %v2172_v3 = vmul.f32 %v2028_v44, %v2028_v44 }
 0x1db   :  { %v2733_v50 = vpop.f32.mrf.mxu1 }
 0x1dc   :  { %2101 = vst [vmem:[#allocation8 + $0xa0] sm:$0xff] %v2023_v4  ;;  %v2132_v51 = vadd.f32 %v2131_v49, %v2023_v4  ;;  %v2171_v27 = vmul.f32 %v2023_v4, %v2023_v4  ;;  %v2201_v53 = vadd.f32 %v2200_v48, %v2170_v47  ;;  %v2038_v54 = vadd.f32 %v2733_v50, %v3221_v14 }
 0x1dd   :  { %v2032_v55 = vpop.f32.mrf.mxu1 }
 0x1de   :  { %v2202_v57 = vadd.f32 %v2201_v53, %v2171_v27  ;;  %2104 = vst [vmem:[#allocation8 + $0xb8] sm:$0xff] %v2038_v54  ;;  %v2033_v41 = vadd.f32 %v2032_v55, %v1711_v0  ;;  %v2133_v5 = vadd.f32 %v2132_v51, %v2028_v44  ;;  %v2174_v22 = vmul.f32 %v2038_v54, %v2038_v54 }
 0x1df   :  { %v2736_v6 = vpop.f32.mrf.mxu1 }
 0x1e0   :  { %2103 = vst [vmem:[#allocation8 + $0xb0] sm:$0xff] %v2033_v41  ;;  %v2134_v10 = vadd.f32 %v2133_v5, %v2033_v41  ;;  %v2173_v12 = vmul.f32 %v2033_v41, %v2033_v41  ;;  %v2203_v52 = vadd.f32 %v2202_v57, %v2172_v3  ;;  %v2048_v58 = vadd.f32 %v2736_v6, %v2672_v19 }
 0x1e1   :  { %v2042_v16 = vpop.f32.mrf.mxu1 }
 0x1e2   :  { %v2204_v24 = vadd.f32 %v2203_v52, %v2173_v12  ;;  %2106 = vst [vmem:[#allocation8 + $0xc8] sm:$0xff] %v2048_v58  ;;  %v2043_v59 = vadd.f32 %v2042_v16, %v1721_v36  ;;  %v2135_v14 = vadd.f32 %v2134_v10, %v2038_v54  ;;  %v2176_v2 = vmul.f32 %v2048_v58, %v2048_v58 }
 0x1e3   :  { %v2739_v26 = vpop.f32.mrf.mxu1 }
 0x1e4   :  { %2105 = vst [vmem:[#allocation8 + $0xc0] sm:$0xff] %v2043_v59  ;;  %v2136_v28 = vadd.f32 %v2135_v14, %v2043_v59  ;;  %v2175_v30 = vmul.f32 %v2043_v59, %v2043_v59  ;;  %v2205_v32 = vadd.f32 %v2204_v24, %v2174_v22  ;;  %v2058_v0 = vadd.f32 %v2739_v26, %v2675_v46 }
 0x1e5   :  { %v2052_v1 = vpop.f32.mrf.mxu1 }
 0x1e6   :  { %v2206_v7 = vadd.f32 %v2205_v32, %v2175_v30  ;;  %2108 = vst [vmem:[#allocation8 + $0xd8] sm:$0xff] %v2058_v0  ;;  %v2053_v9 = vadd.f32 %v2052_v1, %v1731_v56  ;;  %v2137_v11 = vadd.f32 %v2136_v28, %v2048_v58  ;;  %v2178_v62 = vmul.f32 %v2058_v0, %v2058_v0 }
 0x1e7   :  { %v2742_v61 = vpop.f32.mrf.mxu1 }
 0x1e8   :  { %2107 = vst [vmem:[#allocation8 + $0xd0] sm:$0xff] %v2053_v9  ;;  %v2138_v13 = vadd.f32 %v2137_v11, %v2053_v9  ;;  %v2177_v15 = vmul.f32 %v2053_v9, %v2053_v9  ;;  %v2207_v17 = vadd.f32 %v2206_v7, %v2176_v2  ;;  %v2068_v19 = vadd.f32 %v2742_v61, %v2678_v18 }
 0x1e9   :  { %v2062_v23 = vpop.f32.mrf.mxu1 }
 0x1ea   :  { %v2208_v25 = vadd.f32 %v2207_v17, %v2177_v15  ;;  %2110 = vst [vmem:[#allocation8 + $0xe8] sm:$0xff] %v2068_v19  ;;  %v2063_v29 = vadd.f32 %v2062_v23, %v1741_v60  ;;  %v2139_v31 = vadd.f32 %v2138_v13, %v2058_v0  ;;  %v2180_v8 = vmul.f32 %v2068_v19, %v2068_v19 }
 0x1eb   :  { %v2745_v63 = vpop.f32.mrf.mxu1 }
 0x1ec   :  { %2109 = vst [vmem:[#allocation8 + $0xe0] sm:$0xff] %v2063_v29  ;;  %v2140_v33 = vadd.f32 %v2139_v31, %v2063_v29  ;;  %v2179_v34 = vmul.f32 %v2063_v29, %v2063_v29  ;;  %v2209_v35 = vadd.f32 %v2208_v25, %v2178_v62  ;;  %v2078_v36 = vadd.f32 %v2745_v63, %v2681_v21 }
 0x1ed   :  { %v2072_v38 = vpop.f32.mrf.mxu1 }
 0x1ee   :  { %v2210_v39 = vadd.f32 %v2209_v35, %v2179_v34  ;;  %2112 = vst [vmem:[#allocation8 + $0xf8] sm:$0xff] %v2078_v36  ;;  %v2073_v40 = vadd.f32 %v2072_v38, %v1751_v37  ;;  %v2141_v42 = vadd.f32 %v2140_v33, %v2068_v19 }
 0x1f0   :  { %2111 = vst [vmem:[#allocation8 + $0xf0] sm:$0xff] %v2073_v40  ;;  %v2142_v20 = vadd.f32 %v2141_v42, %v2073_v40  ;;  %v2181_v43 = vmul.f32 %v2073_v40, %v2073_v40  ;;  %v2211_v44 = vadd.f32 %v2210_v39, %v2180_v8 }
 0x1f1   :  { %2825 = shalt.err (!%p2822_p5)
}
 0x1f2   :  { %2232 = dma.vmem_to_hbm [thread:$0]  %s2227_s2, 4096, %s3248_s3, [#allocation4], %s2884_s23, %s2884_s23, %s2885_s24   ;;  %v2182_v45 = vmul.f32 %v2078_v36, %v2078_v36  ;;  %v2143_v46 = vadd.f32 %v2142_v20, %v2078_v36  ;;  %v2212_v47 = vadd.f32 %v2211_v44, %v2181_v43 }
 0x1f3   :  { %s2888_s12 = smov [#allocation9]   ;;  %s2889_s14 = smov [#allocation11]  }
 0x1f4   :  { %v2144_v48 = vrot.slane %v2143_v46, 4  ;;  %v2213_v4 = vadd.f32 %v2212_v47, %v2182_v45  ;;  %s2239_s13 = sshll.u32 %s2888_s12, 4  ;;  %s2249_s15 = sshll.u32 %s2889_s14, 4  ;;  %s2240_s13 = int_to_ptr.vmem [resolvable:$true] %s2239_s13  ;;  %s2250_s15 = int_to_ptr.vmem [resolvable:$true] %s2249_s15 }
 0x1f5   :  { %s2834_s3 = scalar_lea.vmem %s2240_s13, 16  ;;  %s2838_s16 = scalar_lea.vmem %s2240_s13, 32 }
 0x1f6   :  { %v2214_v49 = vrot.slane %v2213_v4, 4  ;;  %v2145_v50 = vadd.f32 %v2144_v48, %v2143_v46  ;;  %p2835_p6 = scmp.ne.s32.totalorder %s2240_s13, %s2834_s3  ;;  %p2839_p7 = scmp.lt.s32.totalorder %s2240_s13, %s2240_s13 }
 0x1f7   :  { %p2840_p8 = scmp.lt.s32.totalorder %s2838_s16, %s2834_s3 }
 0x1f8   :  { %v2146_v51 = vrot.slane %v2145_v50, 2  ;;  %v2215_v27 = vadd.f32 %v2214_v49, %v2213_v4 }
 0x1f9   :  { %p2841_p9 = por %p2840_p8, %p2839_p7 }
 0x1fa   :  { %v2147_v53 = vadd.f32 %v2146_v51, %v2145_v50  ;;  %v2216_v54 = vrot.slane %v2215_v27, 2 }
 0x1fb   :  { %p2842_p10 = pnand %p2841_p9, %p2835_p6 }
 0x1fc   :  { %v2148_v55 = vrot.slane %v2147_v53, 1  ;;  %v2217_v56 = vadd.f32 %v2216_v54, %v2215_v27 }
 0x1fe   :  { %v2149_v3 = vadd.f32 %v2148_v55, %v2147_v53  ;;  %v2218_v57 = vrot.slane %v2217_v56, 1 }
 0x200   :  { %2150 = vst [vmem:[#allocation9] sm:$0x1] %v2149_v3  ;;  %v2219_v41 = vadd.f32 %v2218_v57, %v2217_v56 }
 0x201   :  { %2845 = shalt.err (!%p2842_p10)
}
 0x202   :  { %2242 = dma.vmem_to_hbm [thread:$0]  %s2240_s13, 16, %s3249_s4, [#allocation10]   ;;  %2220 = vst [vmem:[#allocation11] sm:$0x1] %v2219_v41 }
 0x203   :  { %s2854_s19 = scalar_lea.vmem %s2250_s15, 16  ;;  %s2858_s20 = scalar_lea.vmem %s2250_s15, 32 }
 0x204   :  { %p2855_p11 = scmp.ne.s32.totalorder %s2250_s15, %s2854_s19  ;;  %p2859_p12 = scmp.lt.s32.totalorder %s2250_s15, %s2250_s15 }
 0x205   :  { %p2860_p13 = scmp.lt.s32.totalorder %s2858_s20, %s2854_s19 }
 0x207   :  { %p2861_p0 = por %p2860_p13, %p2859_p12 }
 0x209   :  { %p2862_p1 = pnand %p2861_p0, %p2855_p11 }
 0x20b   :  { %2865 = shalt.err (!%p2862_p1)
}
 0x20c   :  { %2252 = dma.vmem_to_hbm [thread:$0]  %s2250_s15, 16, %s3250_s5, [#allocation10]  }
 0x20d   :  { %2878 = dma.done.wait [#allocation4], 4096  }
 0x20e   :  { %2879 = vsyncadd [#allocation4], 4294963200 }
 0x20f   :  { %2880 = dma.done.wait [#allocation10], 32  }
 0x210   :  { %2881 = vsyncadd [#allocation10], 4294967264 }
 0x211   :  { %2262 = vsyncpa [#allocation3], 1 }
 0x212   :  { %2263 = vsyncpa [#allocation6], 1 }
 0x213   :  { %2264 = vsyncpa [#allocation4], 1 }
 0x214   :  { %2265 = vsyncpa [#allocation10], 1 }

</bundles_post_ra>
